<compile_context>
chip_gen: v7x
topology: tpu7x:2x2x1
jax: 0.10.0
libtpu: 0.0.40
codegen_flags: <defaults>
</compile_context>

<pallas_src>
import functools

import jax
import jax.numpy as jnp
from jax.experimental import pallas as pl
from jax.experimental.pallas import tpu as pltpu


_LANE = 128            # lane quantum (last dim)
_SUBLANE = 8           # sublane quantum (second-to-last dim)
_TM_MAX = 512          # max token rows per tile
_TN_MAX = 1024         # max output cols per tile
_BUF1_THRESHOLD = 4 << 20      # single-buffer the grid-resident operand above this
_DEFAULT_VMEM_CAP = 64 << 20   # conservative fallback (v7x) if get_tpu_info fails


def _round_up(x, n):
    return ((x + n - 1) // n) * n


def _linear_kernel(x_ref, wt_ref, b_ref, o_ref, *, compute_dtype):
    # Hot path: optional VPU cast (hidden under the MXU), bf16 matmul with f32
    # accumulation, f32 bias add, cast to the requested output dtype.
    x = x_ref[...].astype(compute_dtype)
    acc = jnp.dot(x, wt_ref[...], preferred_element_type=jnp.float32)
    o_ref[...] = (acc + b_ref[...]).astype(o_ref.dtype)


def prepare_worker_params(weight, bias, compute_dtype=jnp.bfloat16):
    """One-time parameter prep on the 'remote worker' (outside the hot path).

    Transposes W to [h_in, h_out] so it is not re-transposed every forward,
    zero-pads ONLY the output-feature dim to a lane multiple (lane-dense
    stores), and casts to the MXU compute dtype.  K stays unpadded.

    weight: [h_out, h_in] f32 (PyTorch nn.Linear convention)
    bias:   [h_out]       f32
    returns (wt [h_in, n_pad] compute_dtype, b2d [1, n_pad] f32, h_out)
    """
    h_out, h_in = weight.shape
    n_pad = _round_up(h_out, _LANE)
    wt = jnp.zeros((h_in, n_pad), compute_dtype)
    wt = wt.at[:, :h_out].set(weight.T.astype(compute_dtype))
    b2d = jnp.zeros((1, n_pad), jnp.float32)
    b2d = b2d.at[0, :h_out].set(bias.astype(jnp.float32))
    return wt, b2d, h_out


def _vmem_budget():
    try:
        cap = int(pltpu.get_tpu_info().vmem_capacity_bytes)
    except Exception:
        cap = _DEFAULT_VMEM_CAP
    # ~51 MiB on a 64 MiB v7x, ~102 MiB on 128 MiB v5e/v6e.
    return (cap * 4) // 5


def worker_module_forward(x, wt, b2d, h_out,
                          compute_dtype=jnp.bfloat16,
                          out_dtype=jnp.float32):
    """WorkerModule.forward -> LocalWrapper.forward -> Linear(x).

    x:   [batch, seq, h_in]   (any float dtype; bf16 upstream is fine)
    wt:  [h_in, n_pad]        compute_dtype (pre-transposed / N-padded weight)
    b2d: [1, n_pad]           float32
    returns [batch, seq, h_out] out_dtype (jnp.bfloat16 halves writeback on v6e)

    NOTE: the MXU runs in bf16 (f32 accumulation), so results diverge from an
    f32 PyTorch reference beyond normal fp32 error.
    """
    batch, seq, h_in = x.shape
    k, n_pad = wt.shape
    assert k == h_in, "weight prepared for a different h_in"
    m = batch * seq

    itm = jnp.dtype(compute_dtype).itemsize
    out_itm = jnp.dtype(out_dtype).itemsize
    x_in_itm = jnp.dtype(x.dtype).itemsize

    # --- tile plan ----------------------------------------------------------
    tn = min(_TN_MAX, n_pad)
    if m <= _TM_MAX:
        tm = _round_up(m, _SUBLANE)                 # one tile covers all rows
    else:
        tm = None
        for cand in (512, 384, 256, 128):           # largest tile, <=~6% junk rows
            if ((-m) % cand) * 16 <= m:
                tm = cand
                break
        if tm is None:
            tm = min((512, 384, 256, 128), key=lambda c: ((-m) % c, -c))
    m_tiles = pl.cdiv(m, tm)
    n_tiles = pl.cdiv(n_pad, tn)

    # --- grid-order + cast policy (HBM traffic model) -----------------------
    x_elems, w_elems = m * k, k * n_pad

    def _x_bytes(reuse):
        # Cheapest of: read x as-is `reuse` times (in-kernel cast) vs one
        # pre-cast pass (rd x + wr bf16) followed by `reuse` bf16 reads.
        in_kernel = x_elems * x_in_itm * reuse
        if jnp.dtype(x.dtype) == jnp.dtype(compute_dtype):
            return in_kernel, False
        pre = x_elems * (x_in_itm + itm) + x_elems * itm * reuse
        return (pre, True) if pre < in_kernel else (in_kernel, False)

    n_outer_xb, n_outer_pre = _x_bytes(n_tiles)   # N outer: x re-read per N tile
    m_outer_xb, m_outer_pre = _x_bytes(1)         # M outer: W re-read per M tile
    n_outer = (n_outer_xb + w_elems * itm) <= (m_outer_xb + w_elems * itm * m_tiles)
    precast = n_outer_pre if n_outer else m_outer_pre
    x_itm = itm if precast else x_in_itm

    # --- VMEM-aware footprint / buffer counts -------------------------------
    # The operand whose block index only changes on the OUTER axis is resident
    # across the whole inner sweep -> single-buffer it when it is large.
    def _plan(tm_, tn_):
        w_bufs = 1 if (n_outer and 2 * k * tn_ * itm > _BUF1_THRESHOLD) else 2
        x_bufs = 1 if ((not n_outer) and 2 * tm_ * k * x_itm > _BUF1_THRESHOLD) else 2
        fp = (x_bufs * tm_ * k * x_itm
              + w_bufs * k * tn_ * itm
              + 2 * tm_ * tn_ * out_itm
              + 2 * tn_ * 4)
        return fp, x_bufs, w_bufs

    budget = _vmem_budget()
    footprint, x_bufs, w_bufs = _plan(tm, tn)
    while footprint > budget and (tn > _LANE or tm > _LANE):
        if tn >= tm and tn > _LANE:
            tn = max(_LANE, tn // 2)
        elif tm > _LANE:
            tm = max(_LANE, _round_up(tm // 2, _SUBLANE))
        else:
            tn = max(_LANE, tn // 2)
        footprint, x_bufs, w_bufs = _plan(tm, tn)

    m_tiles = pl.cdiv(m, tm)
    n_tiles = pl.cdiv(n_pad, tn)
    x_reuse = n_tiles if n_outer else 1
    w_reuse = 1 if n_outer else m_tiles
    # Never cap below the footprint; leave headroom up to the generation budget.
    vmem_limit = max(min(budget, max(2 * footprint, 16 << 20)), footprint)

    # --- grid & specs --------------------------------------------------------
    if n_outer:
        grid = (n_tiles, m_tiles)                       # W tile resident per nj
        x_map = lambda nj, mi: (mi, 0)
        w_map = lambda nj, mi: (0, nj)
        o_map = lambda nj, mi: (mi, nj)
    else:
        grid = (m_tiles, n_tiles)                       # x tile resident per mi
        x_map = lambda mi, nj: (mi, 0)
        w_map = lambda mi, nj: (0, nj)
        o_map = lambda mi, nj: (mi, nj)

    def _spec(shape, index_map, bufs):
        if bufs == 2:
            return pl.BlockSpec(shape, index_map)
        return pl.BlockSpec(shape, index_map, pipeline_mode=pl.Buffered(bufs))

    x_spec = _spec((tm, k), x_map, x_bufs)
    w_spec = _spec((k, tn), w_map, w_bufs)
    b_spec = pl.BlockSpec((1, tn), w_map)               # bias follows W's N tile
    o_spec = pl.BlockSpec((tm, tn), o_map)

    # --- input prep: flatten tokens (metadata reshape only), optional cast ---
    x2d = x.reshape(m, k)
    if precast:
        x2d = x2d.astype(compute_dtype)

    cost = pl.CostEstimate(
        flops=2 * (m_tiles * tm) * k * n_pad,
        transcendentals=0,
        bytes_accessed=(m * k * x_itm * x_reuse          # x (re-)reads
                        + k * n_pad * itm * w_reuse      # W (re-)reads
                        + n_pad * 4                      # bias
                        + m * n_pad * out_itm),          # out writeback
    )

    kernel = functools.partial(_linear_kernel, compute_dtype=compute_dtype)
    out2d = pl.pallas_call(
        kernel,
        out_shape=jax.ShapeDtypeStruct((m, n_pad), out_dtype),
        grid_spec=pltpu.PrefetchScalarGridSpec(
            num_scalar_prefetch=0,
            grid=grid,
            in_specs=[x_spec, w_spec, b_spec],
            out_specs=o_spec,
        ),
        compiler_params=pltpu.CompilerParams(
            dimension_semantics=("parallel", "parallel"),
            vmem_limit_bytes=int(vmem_limit),
        ),
        cost_estimate=cost,
    )(x2d, wt, b2d)

    # Strip only the N padding (no-op when h_out is already a lane multiple).
    # The .cpu()/RRef round-trip in LocalWrapper is host plumbing.
    out2d = out2d if h_out == n_pad else out2d[:, :h_out]
    return out2d.reshape(batch, seq, h_out)


if __name__ == "__main__":
    key = jax.random.PRNGKey(0)
    k_x, k_w, k_b = jax.random.split(key, 3)

    batch, seq, hidden = 2, 8, 32
    x = jax.random.normal(k_x, (batch, seq, hidden), dtype=jnp.float32)
    # Deterministic synthetic parameters for the wrapped nn.Linear(hidden, hidden).
    bound = 1.0 / (hidden ** 0.5)
    weight = jax.random.uniform(k_w, (hidden, hidden), jnp.float32, -bound, bound)
    bias = jax.random.uniform(k_b, (hidden,), jnp.float32, -bound, bound)

    # One-time parameter prep (transpose / N-pad / bf16 cast) — outside the hot path.
    wt, b2d, h_out = prepare_worker_params(weight, bias)

    # out_dtype=jnp.bfloat16 halves HBM writeback on v6e when downstream allows it.
    out = worker_module_forward(x, wt, b2d, h_out, out_dtype=jnp.float32)
    jax.block_until_ready(out)

    # Correctness vs. plain-JAX f32 forward; bf16 MXU inputs (f32 accumulation)
    # => loosened tolerance.
    ref = x @ weight.T + bias
    assert out.shape == (batch, seq, hidden)
    assert jnp.allclose(out, ref, atol=5e-2, rtol=5e-2)
    print("KERNEL_OK")
</pallas_src>

<mosaic_0001>
module attributes {stable_mosaic.version = 11 : i64} {
  func.func @_linear_kernel(%arg0: i32, %arg1: i32, %arg2: memref<16x32xf32, #tpu.memory_space<vmem>>, %arg3: memref<32x128xbf16, #tpu.memory_space<vmem>>, %arg4: memref<1x128xf32, #tpu.memory_space<vmem>>, %arg5: memref<16x128xf32, #tpu.memory_space<vmem>>) attributes {dimension_semantics = [#tpu.dimension_semantics<parallel>, #tpu.dimension_semantics<parallel>], iteration_bounds = array<i64: 1, 1>, scalar_prefetch = 0 : i64, scratch_operands = 0 : i64, tpu.core_type = #tpu.core_type<tc>, window_params = [{transform_indices = @transform_0, window_bounds = array<i64: 16, 32>}, {transform_indices = @transform_1, window_bounds = array<i64: 32, 128>}, {transform_indices = @transform_2, window_bounds = array<i64: 1, 128>}, {transform_indices = @transform_3, window_bounds = array<i64: 16, 128>}]} {
    %c0 = arith.constant 0 : index
    %c0_0 = arith.constant 0 : index
    %0 = vector.load %arg2[%c0, %c0_0] : memref<16x32xf32, #tpu.memory_space<vmem>>, vector<16x32xf32>
    %1 = arith.truncf %0 : vector<16x32xf32> to vector<16x32xbf16>
    %c0_1 = arith.constant 0 : index
    %c0_2 = arith.constant 0 : index
    %2 = vector.load %arg3[%c0_1, %c0_2] : memref<32x128xbf16, #tpu.memory_space<vmem>>, vector<32x128xbf16>
    %cst = arith.constant dense<0.000000e+00> : vector<16x128xf32>
    %3 = tpu.matmul %1, %2, %cst {dimension_numbers = #tpu.dot_dimension_numbers<[1], [0], [0], [1], [0, 0, 1, 1], [], []>} : vector<16x32xbf16>, vector<32x128xbf16>, vector<16x128xf32> -> vector<16x128xf32>
    %c0_3 = arith.constant 0 : index
    %c0_4 = arith.constant 0 : index
    %4 = vector.load %arg4[%c0_3, %c0_4] : memref<1x128xf32, #tpu.memory_space<vmem>>, vector<1x128xf32>
    %5 = vector.broadcast %4 : vector<1x128xf32> to vector<16x128xf32>
    %6 = arith.addf %3, %5 : vector<16x128xf32>
    %c0_5 = arith.constant 0 : index
    %c0_6 = arith.constant 0 : index
    %7 = vector.load %arg5[%c0_5, %c0_6] : memref<16x128xf32, #tpu.memory_space<vmem>>, vector<16x128xf32>
    tpu.vector_store %arg5[%c0_5, %c0_6], %6 {strides = array<i32>} : memref<16x128xf32, #tpu.memory_space<vmem>>, vector<16x128xf32>,
    return
  }
  func.func @transform_0(%arg0: i32, %arg1: i32) -> (i32, i32) {
    %c0_i32 = arith.constant 0 : i32
    %c0_i32_0 = arith.constant 0 : i32
    return %arg1, %c0_i32 : i32, i32
  }
  func.func @transform_1(%arg0: i32, %arg1: i32) -> (i32, i32) {
    %c0_i32 = arith.constant 0 : i32
    %c0_i32_0 = arith.constant 0 : i32
    return %c0_i32, %arg0 : i32, i32
  }
  func.func @transform_2(%arg0: i32, %arg1: i32) -> (i32, i32) {
    %c0_i32 = arith.constant 0 : i32
    %c0_i32_0 = arith.constant 0 : i32
    return %c0_i32, %arg0 : i32, i32
  }
  func.func @transform_3(%arg0: i32, %arg1: i32) -> (i32, i32) {
    %c0_i32 = arith.constant 0 : i32
    return %arg1, %arg0 : i32, i32
  }
}

</mosaic_0001>

<bundles_post_ra>
// kernel: tpu_custom_call.1
= control target key start
LH: loop header
LB: loop body
LE: loop exit
PB: predicated region body
PF: predicated region fallthrough
CT: control target
= control target key end

     0   :  { %8 = vsyncpa [#allocation3], 0  ;;  %s307_s0 = inlined_call_operand.hbm [shape: f32[16,32], index: 0, kind: input, shape index: {}]   ;;  %s308_s1 = inlined_call_operand.hbm [shape: bf16[32,128], index: 1, kind: input, shape index: {}]   ;;  %s309_s2 = inlined_call_operand.vmem [shape: f32[1,128], index: 2, kind: input, shape index: {}]   ;;  %s310_s3 = inlined_call_operand.hbm [shape: f32[16,128], index: 3, kind: output, shape index: {}]  }
   0x1   :  { %9 = vsyncpa [#allocation6], 0 }
   0x2   :  { %10 = vsyncpa [#allocation4], 0  ;;  %s233_s12 = smov [#allocation2]   ;;  %s161_s16 = scalar_lea.hbm %s307_s0, 256 }
   0x3   :  { %s16_s13 = sshll.u32 %s233_s12, 4  ;;  %p162_p0 = scmp.ne.s32.totalorder %s307_s0, %s161_s16  ;;  %s17_s13 = int_to_ptr.vmem [resolvable:$true] %s16_s13 }
   0x4   :  { %p165_p1 = scmp.lt.u32.totalorder %s161_s16, %s307_s0 }
   0x6   :  { %p167_p2 = pnand %p165_p1, %p162_p0 }
   0x8   :  { %170 = shalt.err (!%p167_p2)
}
   0x9   :  { %s171_s21 = scalar_lea.vmem %s17_s13, 256  ;;  %p176_p4 = scmp.lt.s32.totalorder %s17_s13, %s17_s13 }
   0xa   :  { %p172_p3 = scmp.ne.s32.totalorder %s17_s13, %s171_s21  ;;  %p177_p5 = scmp.lt.s32.totalorder %s171_s21, %s171_s21 }
   0xc   :  { %p178_p6 = por %p177_p5, %p176_p4 }
   0xe   :  { %p179_p7 = pnand %p178_p6, %p172_p3 }
  0x10   :  { %182 = shalt.err (!%p179_p7)
}
  0x11   :  { %s234_s22 = smov 128   ;;  %s235_s23 = smov 8  }
  0x12   :  { %22 = dma.hbm_to_vmem [thread:$0]  %s307_s0, 256, %s17_s13, [#allocation3], %s234_s22, %s234_s22, %s235_s23  }
  0x13   :  { %s236_s26 = smov [#allocation5]   ;;  %s183_s30 = scalar_lea.hbm %s308_s1, 256 }
  0x14   :  { %s28_s27 = sshll.u32 %s236_s26, 4  ;;  %p184_p8 = scmp.ne.s32.totalorder %s308_s1, %s183_s30  ;;  %s29_s27 = int_to_ptr.vmem [resolvable:$true] %s28_s27 }
  0x15   :  { %p187_p9 = scmp.lt.u32.totalorder %s183_s30, %s308_s1 }
  0x17   :  { %p189_p10 = pnand %p187_p9, %p184_p8 }
  0x19   :  { %192 = shalt.err (!%p189_p10)
}
  0x1a   :  { %s193_s8 = scalar_lea.vmem %s29_s27, 256  ;;  %p198_p12 = scmp.lt.s32.totalorder %s29_s27, %s29_s27 }
  0x1b   :  { %p194_p11 = scmp.ne.s32.totalorder %s29_s27, %s193_s8  ;;  %p199_p13 = scmp.lt.s32.totalorder %s193_s8, %s193_s8 }
  0x1d   :  { %p200_p0 = por %p199_p13, %p198_p12 }
  0x1f   :  { %p201_p1 = pnand %p200_p0, %p194_p11 }
  0x21   :  { %204 = shalt.err (!%p201_p1)
}
  0x22   :  { %s237_s0 = smov 64   ;;  %s238_s9 = smov 4  }
  0x23   :  { %34 = dma.hbm_to_vmem [thread:$0]  %s308_s1, 256, %s29_s27, [#allocation6], %s237_s0, %s237_s0, %s238_s9  }
  0x24   :  { %227 = dma.done.wait [#allocation3], 256  }
  0x25   :  { %228 = vsyncadd [#allocation3], 4294967040 }
  0x26   :  { %229 = dma.done.wait [#allocation6], 256  }
  0x27   :  { %230 = vsyncadd [#allocation6], 4294967040  ;;  %v239_v0 = vmov 0.0   ;;  %vm240_vm0 = vmmov 0   ;;  %v159_v1 = vld [vmem:[#allocation5] sm:$0xff]   ;;  %v160_v2 = vld [vmem:[#allocation5 + $0x8] sm:$0xff]  }
  0x28   :  { %142 = vmatprep.subr.bf16.mxu0 %v239_v0  ;;  %146 = vmatprep.mubr.msk.bf16.mxu0 %vm240_vm0, %v239_v0  ;;  %v44_v3 = vld [vmem:[#allocation2] sm:$0xff]  ;;  %v45_v4 = vld [vmem:[#allocation2 + $0x8] sm:$0xff]  ;;  %vm70_vm1 = vcmask 261120   ;;  %s241_s13 = smov [#allocation7]  }
  0x29   :  { %143 = vmatpush3.bf16.msra.mxu0 %v159_v1  ;;  %v46_v5 = vpack.c.bf16 %v45_v4, %v44_v3  ;;  %v135_v6 = vld [vmem:[%s309_s2] ss:$0 sm:$0xff]  ;;  %s122_s14 = sshll.u32 %s241_s13, 4  ;;  %s123_s14 = int_to_ptr.vmem [resolvable:$true] %s122_s14 }
  0x2a   :  { %144 = vmatprep.subr.bf16.mxu0 %v239_v0  ;;  %s205_s15 = scalar_lea.vmem %s123_s14, 256  ;;  %p210_p3 = scmp.lt.s32.totalorder %s123_s14, %s123_s14 }
  0x2b   :  { %p206_p2 = scmp.ne.s32.totalorder %s123_s14, %s205_s15  ;;  %p211_p4 = scmp.lt.s32.totalorder %s205_s15, %s205_s15 }
  0x2d   :  { %145 = vmatpush3.bf16.msra.mxu0 %v160_v2  ;;  %p212_p5 = por %p211_p4, %p210_p3 }
  0x2f   :  { %p213_p6 = pnand %p212_p5, %p206_p2 }
  0x30   :  { %147 = vmatmul.mubr.msk.bf16.vlgmr.msra.gmra.mrb[0].mxu0 %vm70_vm1, %v46_v5 }
 0x103   :  { %v108_v7 = vpop.f32.mrb[0].mxu0 }
 0x104   :  { %v109_v8 = vadd.f32 %v135_v6, %v108_v7  ;;  %v148_v9 = vpop.f32.mrb[1].mxu0 }
 0x105   :  { %v111_v10 = vpop.f32.mrb[2].mxu0 }
 0x106   :  { %115 = vst [vmem:[#allocation7] sm:$0xff] %v109_v8  ;;  %v112_v11 = vadd.f32 %v135_v6, %v111_v10  ;;  %v149_v12 = vpop.f32.mrb[3].mxu0 }
 0x108   :  { %116 = vst [vmem:[#allocation7 + $0x8] sm:$0xff] %v112_v11 }
 0x109   :  { %216 = shalt.err (!%p213_p6)
}
 0x10a   :  { %s217_s17 = scalar_lea.hbm %s310_s3, 256 }
 0x10b   :  { %p218_p7 = scmp.ne.s32.totalorder %s310_s3, %s217_s17  ;;  %p221_p8 = scmp.lt.u32.totalorder %s217_s17, %s310_s3 }
 0x10d   :  { %p223_p9 = pnand %p221_p8, %p218_p7 }
 0x10f   :  { %226 = shalt.err (!%p223_p9)
}
 0x110   :  { %128 = dma.vmem_to_hbm [thread:$0]  %s123_s14, 256, %s310_s3, [#allocation4], %s234_s22, %s234_s22, %s235_s23  }
 0x111   :  { %231 = dma.done.wait [#allocation4], 256  }
 0x112   :  { %232 = vsyncadd [#allocation4], 4294967040 }
 0x113   :  { %132 = vsyncpa [#allocation3], 1 }
 0x114   :  { %133 = vsyncpa [#allocation6], 1 }
 0x115   :  { %134 = vsyncpa [#allocation4], 1 }

</bundles_post_ra>
